<compile_context>
chip_gen: v7x
topology: tpu7x:2x2x1
jax: 0.10.0
libtpu: 0.0.40
codegen_flags: <defaults>
</compile_context>

<pallas_src>
import numpy as np
import jax
import jax.numpy as jnp
from jax.experimental import pallas as pl
from jax.experimental.pallas import tpu as pltpu

# ---- physics constants (same as the PyTorch script) ----
AIR_RESISTANCE_COEF = 0.01
BULLET_MASS = 0.1
G = 9.81
INITIAL_VELOCITY = 100.0
LAUNCH_ANGLE = np.radians(30.0)

X0 = 0.0
Y0 = 0.0
VX0 = float(INITIAL_VELOCITY * np.cos(LAUNCH_ANGLE))
VY0 = float(INITIAL_VELOCITY * np.sin(LAUNCH_ANGLE))
GRAVITY_TERM = 0.5 * G


def pinn_kernel(t_ref, w1_ref, b1_ref, w2_ref, b2_ref,
                w3_ref, b3_ref, w4x_ref, w4y_ref, b4_ref, out_ref):
    t = t_ref[...]                                           # (1, T) f32, lane-dense

    # Layer 1: Linear(1 -> 64) + Tanh.  K = 1 -> pure VPU broadcast, stays f32.
    h = jnp.tanh(w1_ref[...] * t + b1_ref[...])              # (64,1)*(1,T)+(64,1) -> (64,T)

    # Layer 2: Linear(64 -> 128) + Tanh.  bf16 MXU operands, f32 accumulate.
    h = jnp.tanh(jnp.dot(w2_ref[...], h.astype(jnp.bfloat16),
                         preferred_element_type=jnp.float32) + b2_ref[...])   # (128, T)

    # Layer 3: Linear(128 -> 64) + Tanh.  bf16 MXU operands, f32 accumulate.
    h = jnp.tanh(jnp.dot(w3_ref[...], h.astype(jnp.bfloat16),
                         preferred_element_type=jnp.float32) + b3_ref[...])   # (64, T)

    # Layer 4: Linear(64 -> 2) on VPU + XLU (kept off the MXU: only 2 output
    # rows would waste a full MXU streaming pass over T lanes).
    nn_x = jnp.sum(w4x_ref[...] * h, axis=0, keepdims=True) + b4_ref[0:1, :]  # (1, T)
    nn_y = jnp.sum(w4y_ref[...] * h, axis=0, keepdims=True) + b4_ref[1:2, :]  # (1, T)

    # Physics baseline (X0 = Y0 = 0) built from Python scalars only -- no
    # captured array constants.
    physics_x = VX0 * t                                      # (1, T)
    physics_y = VY0 * t - GRAVITY_TERM * (t * t)             # (1, T)

    out_ref[0:1, :] = physics_x + nn_x                       # row 0 = x
    out_ref[1:2, :] = physics_y + nn_y                       # row 1 = y


def _cdiv(a, b):
    return -(-a // b)


def _round_up(x, m):
    return (x + m - 1) // m * m


def _choose_tile(n, tile_m):
    """Lane-tile: multiple of 128, <= tile_m, minimal padding, and >= 2 grid
    steps whenever there is enough work (so v7x's 2 TensorCores both get work)."""
    tile_cap = max(128, (tile_m // 128) * 128)       # enforce 128-multiple cap
    steps = _cdiv(n, tile_cap)
    if n > 128:
        steps = max(steps, 2)                        # use both v7x TCs
        if steps % 2:
            steps += 1                               # even step count -> balanced
    return min(tile_cap, _round_up(_cdiv(n, steps), 128))


def _prep_params(params):
    """Convert PyTorch-layout params to kernel layout: bf16 matmul weights,
    layer-4 weight split into two (64,1) column vectors."""
    w1, b1, w2, b2, w3, b3, w4, b4 = params
    return (w1.astype(jnp.float32), b1.astype(jnp.float32),
            w2.astype(jnp.bfloat16), b2.astype(jnp.float32),
            w3.astype(jnp.bfloat16), b3.astype(jnp.float32),
            w4[0:1, :].T.astype(jnp.float32),        # (64, 1)
            w4[1:2, :].T.astype(jnp.float32),        # (64, 1)
            b4.astype(jnp.float32))                  # (2, 1)


def pinn_forward(t, params, tile_m=4096):
    """t: (N, 1) or (N,) float32.
    params: (W1, b1, W2, b2, W3, b3, W4, b4) with W: (out, in), b: (out, 1).
    Returns (N, 2) = [x, y]."""
    n = t.shape[0]
    t_row = jnp.reshape(t.astype(jnp.float32), (1, n))

    tile = _choose_tile(n, tile_m)
    steps = _cdiv(n, tile)
    n_pad = steps * tile
    if n_pad != n:
        t_row = jnp.pad(t_row, ((0, 0), (0, n_pad - n)))

    prepped = _prep_params(params)
    # Full-shape, constant-index specs: weights fetched once, VMEM-resident.
    weight_specs = [pl.BlockSpec(p.shape, lambda i: (0, 0)) for p in prepped]

    out_t = pl.pallas_call(
        pinn_kernel,
        out_shape=jax.ShapeDtypeStruct((2, n_pad), jnp.float32),
        grid=(steps,),
        in_specs=[pl.BlockSpec((1, tile), lambda i: (0, i))] + weight_specs,
        out_specs=pl.BlockSpec((2, tile), lambda i: (0, i)),
        compiler_params=pltpu.CompilerParams(
            dimension_semantics=("parallel",)),       # batch tiles across TCs
    )(t_row, *prepped)

    return out_t[:, :n].T                             # (N, 2)


def init_params(key):
    """Deterministic init mimicking nn.Linear default (U[-1/sqrt(fan_in), +]).
    PyTorch layout: W (out, in), b (out, 1)."""
    sizes = [(1, 64), (64, 128), (128, 64), (64, 2)]
    params = []
    for (fan_in, fan_out) in sizes:
        key, kw, kb = jax.random.split(key, 3)
        bound = 1.0 / np.sqrt(fan_in)
        w = jax.random.uniform(kw, (fan_out, fan_in), jnp.float32, -bound, bound)
        b = jax.random.uniform(kb, (fan_out, 1), jnp.float32, -bound, bound)
        params += [w, b]
    return tuple(params)


def pinn_forward_ref(t, params):
    """Pure-JAX f32 reference (batch-major, like the PyTorch module)."""
    w1, b1, w2, b2, w3, b3, w4, b4 = params
    h = jnp.tanh(t @ w1.T + b1.T)
    h = jnp.tanh(h @ w2.T + b2.T)
    h = jnp.tanh(h @ w3.T + b3.T)
    nn_out = h @ w4.T + b4.T
    px = X0 + VX0 * t
    py = Y0 + VY0 * t - GRAVITY_TERM * t ** 2
    return jnp.concatenate([px + nn_out[:, 0:1], py + nn_out[:, 1:2]], axis=1)


# TODO(synk): get_physics_loss needs autograd w.r.t. t (training-time loss),
# not part of the forward kernel, so it is omitted.

if __name__ == "__main__":
    key = jax.random.PRNGKey(0)
    key, kt = jax.random.split(key)
    params = init_params(key)

    # Tolerances are loosened vs the f32 reference because layers 2-3 use bf16
    # MXU operands (f32 accumulate); the physics part is exact f32.
    RTOL, ATOL = 2e-2, 2e-1

    # Small batch (single grid step, padded to 128 lanes).
    t_small = jax.random.uniform(kt, (8, 1), jnp.float32, 0.0, 10.0)
    out_small = jax.block_until_ready(pinn_forward(t_small, params))
    np.testing.assert_allclose(np.asarray(out_small),
                               np.asarray(pinn_forward_ref(t_small, params)),
                               rtol=RTOL, atol=ATOL)

    # Ragged multi-tile batch (grid + padding path) with a tiny tile cap.
    t_big = jax.random.uniform(kt, (300, 1), jnp.float32, 0.0, 10.0)
    out_big = jax.block_until_ready(pinn_forward(t_big, params, tile_m=128))
    np.testing.assert_allclose(np.asarray(out_big),
                               np.asarray(pinn_forward_ref(t_big, params)),
                               rtol=RTOL, atol=ATOL)

    # Default tile cap: exercises the "split into >=2 steps for megacore" path.
    out_big2 = jax.block_until_ready(pinn_forward(t_big, params))
    np.testing.assert_allclose(np.asarray(out_big2),
                               np.asarray(pinn_forward_ref(t_big, params)),
                               rtol=RTOL, atol=ATOL)

    print("KERNEL_OK")
</pallas_src>

<mosaic_0001>
module attributes {stable_mosaic.version = 11 : i64} {
  func.func @pinn_kernel(%arg0: i32, %arg1: memref<1x128xf32, #tpu.memory_space<vmem>>, %arg2: memref<64x1xf32, #tpu.memory_space<vmem>>, %arg3: memref<64x1xf32, #tpu.memory_space<vmem>>, %arg4: memref<128x64xbf16, #tpu.memory_space<vmem>>, %arg5: memref<128x1xf32, #tpu.memory_space<vmem>>, %arg6: memref<64x128xbf16, #tpu.memory_space<vmem>>, %arg7: memref<64x1xf32, #tpu.memory_space<vmem>>, %arg8: memref<64x1xf32, #tpu.memory_space<vmem>>, %arg9: memref<64x1xf32, #tpu.memory_space<vmem>>, %arg10: memref<2x1xf32, #tpu.memory_space<vmem>>, %arg11: memref<2x128xf32, #tpu.memory_space<vmem>>) attributes {dimension_semantics = [#tpu.dimension_semantics<parallel>], iteration_bounds = array<i64: 1>, scalar_prefetch = 0 : i64, scratch_operands = 0 : i64, tpu.core_type = #tpu.core_type<tc>, window_params = [{transform_indices = @transform_0, window_bounds = array<i64: 1, 128>}, {pipeline_mode = #tpu.pipeline_mode<synchronous>, transform_indices = @transform_1, window_bounds = array<i64: 64, 1>}, {pipeline_mode = #tpu.pipeline_mode<synchronous>, transform_indices = @transform_2, window_bounds = array<i64: 64, 1>}, {pipeline_mode = #tpu.pipeline_mode<synchronous>, transform_indices = @transform_3, window_bounds = array<i64: 128, 64>}, {pipeline_mode = #tpu.pipeline_mode<synchronous>, transform_indices = @transform_4, window_bounds = array<i64: 128, 1>}, {pipeline_mode = #tpu.pipeline_mode<synchronous>, transform_indices = @transform_5, window_bounds = array<i64: 64, 128>}, {pipeline_mode = #tpu.pipeline_mode<synchronous>, transform_indices = @transform_6, window_bounds = array<i64: 64, 1>}, {pipeline_mode = #tpu.pipeline_mode<synchronous>, transform_indices = @transform_7, window_bounds = array<i64: 64, 1>}, {pipeline_mode = #tpu.pipeline_mode<synchronous>, transform_indices = @transform_8, window_bounds = array<i64: 64, 1>}, {pipeline_mode = #tpu.pipeline_mode<synchronous>, transform_indices = @transform_9, window_bounds = array<i64: 2, 1>}, {transform_indices = @transform_10, window_bounds = array<i64: 2, 128>}]} {
    %c0 = arith.constant 0 : index
    %c0_0 = arith.constant 0 : index
    %0 = vector.load %arg1[%c0, %c0_0] : memref<1x128xf32, #tpu.memory_space<vmem>>, vector<1x128xf32>
    %c0_1 = arith.constant 0 : index
    %c0_2 = arith.constant 0 : index
    %1 = vector.load %arg2[%c0_1, %c0_2] : memref<64x1xf32, #tpu.memory_space<vmem>>, vector<64x1xf32>
    %2 = vector.broadcast %1 : vector<64x1xf32> to vector<64x128xf32>
    %3 = vector.broadcast %0 : vector<1x128xf32> to vector<64x128xf32>
    %4 = arith.mulf %2, %3 : vector<64x128xf32>
    %c0_3 = arith.constant 0 : index
    %c0_4 = arith.constant 0 : index
    %5 = vector.load %arg3[%c0_3, %c0_4] : memref<64x1xf32, #tpu.memory_space<vmem>>, vector<64x1xf32>
    %6 = vector.broadcast %5 : vector<64x1xf32> to vector<64x128xf32>
    %7 = arith.addf %4, %6 : vector<64x128xf32>
    %8 = math.tanh %7 : vector<64x128xf32>
    %c0_5 = arith.constant 0 : index
    %c0_6 = arith.constant 0 : index
    %9 = vector.load %arg4[%c0_5, %c0_6] : memref<128x64xbf16, #tpu.memory_space<vmem>>, vector<128x64xbf16>
    %10 = arith.truncf %8 : vector<64x128xf32> to vector<64x128xbf16>
    %cst = arith.constant dense<0.000000e+00> : vector<128x128xf32>
    %11 = tpu.matmul %9, %10, %cst {dimension_numbers = #tpu.dot_dimension_numbers<[1], [0], [0], [1], [0, 0, 1, 1], [], []>} : vector<128x64xbf16>, vector<64x128xbf16>, vector<128x128xf32> -> vector<128x128xf32>
    %c0_7 = arith.constant 0 : index
    %c0_8 = arith.constant 0 : index
    %12 = vector.load %arg5[%c0_7, %c0_8] : memref<128x1xf32, #tpu.memory_space<vmem>>, vector<128x1xf32>
    %13 = vector.broadcast %12 : vector<128x1xf32> to vector<128x128xf32>
    %14 = arith.addf %11, %13 : vector<128x128xf32>
    %15 = math.tanh %14 : vector<128x128xf32>
    %c0_9 = arith.constant 0 : index
    %c0_10 = arith.constant 0 : index
    %16 = vector.load %arg6[%c0_9, %c0_10] : memref<64x128xbf16, #tpu.memory_space<vmem>>, vector<64x128xbf16>
    %17 = arith.truncf %15 : vector<128x128xf32> to vector<128x128xbf16>
    %cst_11 = arith.constant dense<0.000000e+00> : vector<64x128xf32>
    %18 = tpu.matmul %16, %17, %cst_11 {dimension_numbers = #tpu.dot_dimension_numbers<[1], [0], [0], [1], [0, 0, 1, 1], [], []>} : vector<64x128xbf16>, vector<128x128xbf16>, vector<64x128xf32> -> vector<64x128xf32>
    %c0_12 = arith.constant 0 : index
    %c0_13 = arith.constant 0 : index
    %19 = vector.load %arg7[%c0_12, %c0_13] : memref<64x1xf32, #tpu.memory_space<vmem>>, vector<64x1xf32>
    %20 = vector.broadcast %19 : vector<64x1xf32> to vector<64x128xf32>
    %21 = arith.addf %18, %20 : vector<64x128xf32>
    %22 = math.tanh %21 : vector<64x128xf32>
    %c0_14 = arith.constant 0 : index
    %c0_15 = arith.constant 0 : index
    %23 = vector.load %arg8[%c0_14, %c0_15] : memref<64x1xf32, #tpu.memory_space<vmem>>, vector<64x1xf32>
    %24 = vector.broadcast %23 : vector<64x1xf32> to vector<64x128xf32>
    %25 = arith.mulf %24, %22 : vector<64x128xf32>
    %cst_16 = arith.constant dense<0.000000e+00> : vector<128xf32>
    %26 = vector.multi_reduction <add>, %25, %cst_16 [0] : vector<64x128xf32> to vector<128xf32>
    %27 = vector.shape_cast %26 : vector<128xf32> to vector<1x128xf32>
    %c0_17 = arith.constant 0 : index
    %c0_18 = arith.constant 0 : index
    %28 = vector.load %arg10[%c0_17, %c0_18] : memref<2x1xf32, #tpu.memory_space<vmem>>, vector<1x1xf32>
    %29 = vector.broadcast %28 : vector<1x1xf32> to vector<1x128xf32>
    %30 = arith.addf %27, %29 : vector<1x128xf32>
    %c0_19 = arith.constant 0 : index
    %c0_20 = arith.constant 0 : index
    %31 = vector.load %arg9[%c0_19, %c0_20] : memref<64x1xf32, #tpu.memory_space<vmem>>, vector<64x1xf32>
    %32 = vector.broadcast %31 : vector<64x1xf32> to vector<64x128xf32>
    %33 = arith.mulf %32, %22 : vector<64x128xf32>
    %cst_21 = arith.constant dense<0.000000e+00> : vector<128xf32>
    %34 = vector.multi_reduction <add>, %33, %cst_21 [0] : vector<64x128xf32> to vector<128xf32>
    %35 = vector.shape_cast %34 : vector<128xf32> to vector<1x128xf32>
    %c1 = arith.constant 1 : index
    %c0_22 = arith.constant 0 : index
    %36 = vector.load %arg10[%c1, %c0_22] : memref<2x1xf32, #tpu.memory_space<vmem>>, vector<1x1xf32>
    %37 = vector.broadcast %36 : vector<1x1xf32> to vector<1x128xf32>
    %38 = arith.addf %35, %37 : vector<1x128xf32>
    %cst_23 = arith.constant 86.602539 : f32
    %39 = vector.broadcast %cst_23 : f32 to vector<1x128xf32>
    %40 = arith.mulf %39, %0 : vector<1x128xf32>
    %cst_24 = arith.constant 5.000000e+01 : f32
    %41 = vector.broadcast %cst_24 : f32 to vector<1x128xf32>
    %42 = arith.mulf %41, %0 : vector<1x128xf32>
    %43 = arith.mulf %0, %0 : vector<1x128xf32>
    %cst_25 = arith.constant 4.905000e+00 : f32
    %44 = vector.broadcast %cst_25 : f32 to vector<1x128xf32>
    %45 = arith.mulf %44, %43 : vector<1x128xf32>
    %46 = arith.subf %42, %45 : vector<1x128xf32>
    %47 = arith.addf %40, %30 : vector<1x128xf32>
    %c0_26 = arith.constant 0 : index
    %c0_27 = arith.constant 0 : index
    %48 = vector.load %arg11[%c0_26, %c0_27] : memref<2x128xf32, #tpu.memory_space<vmem>>, vector<1x128xf32>
    tpu.vector_store %arg11[%c0_26, %c0_27], %47 {strides = array<i32>} : memref<2x128xf32, #tpu.memory_space<vmem>>, vector<1x128xf32>,
    %49 = arith.addf %46, %38 : vector<1x128xf32>
    %c1_28 = arith.constant 1 : index
    %c0_29 = arith.constant 0 : index
    %50 = vector.load %arg11[%c1_28, %c0_29] : memref<2x128xf32, #tpu.memory_space<vmem>>, vector<1x128xf32>
    tpu.vector_store %arg11[%c1_28, %c0_29], %49 {strides = array<i32>} : memref<2x128xf32, #tpu.memory_space<vmem>>, vector<1x128xf32>,
    return
  }
  func.func @transform_0(%arg0: i32) -> (i32, i32) {
    %c0_i32 = arith.constant 0 : i32
    %c0_i32_0 = arith.constant 0 : i32
    return %c0_i32, %arg0 : i32, i32
  }
  func.func @transform_1(%arg0: i32) -> (i32, i32) {
    %c0_i32 = arith.constant 0 : i32
    %c0_i32_0 = arith.constant 0 : i32
    %c0_i32_1 = arith.constant 0 : i32
    return %c0_i32, %c0_i32_0 : i32, i32
  }
  func.func @transform_2(%arg0: i32) -> (i32, i32) {
    %c0_i32 = arith.constant 0 : i32
    %c0_i32_0 = arith.constant 0 : i32
    %c0_i32_1 = arith.constant 0 : i32
    return %c0_i32, %c0_i32_0 : i32, i32
  }
  func.func @transform_3(%arg0: i32) -> (i32, i32) {
    %c0_i32 = arith.constant 0 : i32
    %c0_i32_0 = arith.constant 0 : i32
    %c0_i32_1 = arith.constant 0 : i32
    return %c0_i32, %c0_i32_0 : i32, i32
  }
  func.func @transform_4(%arg0: i32) -> (i32, i32) {
    %c0_i32 = arith.constant 0 : i32
    %c0_i32_0 = arith.constant 0 : i32
    %c0_i32_1 = arith.constant 0 : i32
    return %c0_i32, %c0_i32_0 : i32, i32
  }
  func.func @transform_5(%arg0: i32) -> (i32, i32) {
    %c0_i32 = arith.constant 0 : i32
    %c0_i32_0 = arith.constant 0 : i32
    %c0_i32_1 = arith.constant 0 : i32
    return %c0_i32, %c0_i32_0 : i32, i32
  }
  func.func @transform_6(%arg0: i32) -> (i32, i32) {
    %c0_i32 = arith.constant 0 : i32
    %c0_i32_0 = arith.constant 0 : i32
    %c0_i32_1 = arith.constant 0 : i32
    return %c0_i32, %c0_i32_0 : i32, i32
  }
  func.func @transform_7(%arg0: i32) -> (i32, i32) {
    %c0_i32 = arith.constant 0 : i32
    %c0_i32_0 = arith.constant 0 : i32
    %c0_i32_1 = arith.constant 0 : i32
    return %c0_i32, %c0_i32_0 : i32, i32
  }
  func.func @transform_8(%arg0: i32) -> (i32, i32) {
    %c0_i32 = arith.constant 0 : i32
    %c0_i32_0 = arith.constant 0 : i32
    %c0_i32_1 = arith.constant 0 : i32
    return %c0_i32, %c0_i32_0 : i32, i32
  }
  func.func @transform_9(%arg0: i32) -> (i32, i32) {
    %c0_i32 = arith.constant 0 : i32
    %c0_i32_0 = arith.constant 0 : i32
    %c0_i32_1 = arith.constant 0 : i32
    return %c0_i32, %c0_i32_0 : i32, i32
  }
  func.func @transform_10(%arg0: i32) -> (i32, i32) {
    %c0_i32 = arith.constant 0 : i32
    %c0_i32_0 = arith.constant 0 : i32
    return %c0_i32, %arg0 : i32, i32
  }
}

</mosaic_0001>

<bundles_post_ra>
// kernel: tpu_custom_call.1
= control target key start
LH: loop header
LB: loop body
LE: loop exit
PB: predicated region body
PF: predicated region fallthrough
CT: control target
= control target key end

     0   :  { %v990_v2 = vmov 0   ;;  %s1287_s0 = inlined_call_operand.vmem [shape: f32[1,128], index: 0, kind: input, shape index: {}]   ;;  %s1288_s1 = inlined_call_operand.vmem [shape: f32[64,1], index: 1, kind: input, shape index: {}]   ;;  %s1289_s2 = inlined_call_operand.vmem [shape: f32[64,1], index: 2, kind: input, shape index: {}]   ;;  %s1290_s3 = inlined_call_operand.vmem [shape: bf16[128,64], index: 3, kind: input, shape index: {}]   ;;  %s1291_s4 = inlined_call_operand.vmem [shape: f32[128,1], index: 4, kind: input, shape index: {}]   ;;  %s1292_s5 = inlined_call_operand.vmem [shape: bf16[64,128], index: 5, kind: input, shape index: {}]   ;;  %s1293_s6 = inlined_call_operand.vmem [shape: f32[64,1], index: 6, kind: input, shape index: {}]   ;;  %s1294_s7 = inlined_call_operand.vmem [shape: f32[64,1], index: 7, kind: input, shape index: {}]   ;;  %s1295_s8 = inlined_call_operand.vmem [shape: f32[64,1], index: 8, kind: input, shape index: {}]   ;;  %s1296_s9 = inlined_call_operand.vmem [shape: f32[2,1], index: 9, kind: input, shape index: {}]   ;;  %s1297_s10 = inlined_call_operand.hbm [shape: f32[2,128], index: 10, kind: output, shape index: {}]  }
   0x1   :  { %v100_v0 = vld [vmem:[%s1289_s2] sm:$0xff]  ;;  %889 = vset.pattern.permute.xlu1 %v990_v2  ;;  %888 = vset.pattern.permute.xlu0 %v990_v2  ;;  %v101_v3 = vld [vmem:[%s1289_s2 + $0x8] sm:$0xff]  ;;  %v41_v5 = vld [vmem:[%s1288_s1 + $0x18] sm:$0xff] }
   0x2   :  { %v38_v1 = vld [vmem:[%s1288_s1] sm:$0xff]  ;;  %110 = vperm.xlu1 %889, %v100_v0   ;;  %v39_v4 = vld [vmem:[%s1288_s1 + $0x8] sm:$0xff]  ;;  %v40_v6 = vld [vmem:[%s1288_s1 + $0x10] sm:$0xff] }
   0x3   :  { %48 = vperm.xlu0 %888, %v38_v1   ;;  %v103_v7 = vld [vmem:[%s1289_s2 + $0x18] sm:$0xff]  ;;  %v102_v8 = vld [vmem:[%s1289_s2 + $0x10] sm:$0xff]  ;;  %v43_v9 = vld [vmem:[%s1288_s1 + $0x28] sm:$0xff] }
   0x4   :  { %v42_v10 = vld [vmem:[%s1288_s1 + $0x20] sm:$0xff]  ;;  %v105_v11 = vld [vmem:[%s1289_s2 + $0x28] sm:$0xff]  ;;  %v45_v13 = vld [vmem:[%s1288_s1 + $0x38] sm:$0xff] }
   0x5   :  { %v104_v12 = vld [vmem:[%s1289_s2 + $0x20] sm:$0xff]  ;;  %v44_v14 = vld [vmem:[%s1288_s1 + $0x30] sm:$0xff]  ;;  %v107_v15 = vld [vmem:[%s1289_s2 + $0x38] sm:$0xff] }
   0x6   :  { %115 = vperm.xlu1 %889, %v101_v3   ;;  %v106_v16 = vld [vmem:[%s1289_s2 + $0x30] sm:$0xff] }
   0x7   :  { %53 = vperm.xlu0 %888, %v39_v4  }
   0xa   :  { %63 = vperm.xlu1 %889, %v41_v5  }
   0xb   :  { %58 = vperm.xlu0 %888, %v40_v6  }
   0xe   :  { %125 = vperm.xlu1 %889, %v103_v7  }
   0xf   :  { %120 = vperm.xlu0 %888, %v102_v8  }
  0x12   :  { %73 = vperm.xlu1 %889, %v43_v9  }
  0x13   :  { %68 = vperm.xlu0 %888, %v42_v10  }
  0x16   :  { %135 = vperm.xlu1 %889, %v105_v11  }
  0x17   :  { %130 = vperm.xlu0 %888, %v104_v12  }
  0x1a   :  { %83 = vperm.xlu1 %889, %v45_v13  }
  0x1b   :  { %78 = vperm.xlu0 %888, %v44_v14  }
  0x1c   :  { %15 = vsyncpa [#allocation3], 0  ;;  %v185_v17 = vld [vmem:[%s1291_s4 + $0x8] sm:$0xff]  ;;  %v184_v18 = vld [vmem:[%s1291_s4] sm:$0xff]  ;;  %vm320_vm0 = vcmask 523264   ;;  %v87_v60 = vlaneseq }
  0x1d   :  { %v187_v19 = vld [vmem:[%s1291_s4 + $0x18] sm:$0xff]  ;;  %v186_v20 = vld [vmem:[%s1291_s4 + $0x10] sm:$0xff]  ;;  %v189_v21 = vld [vmem:[%s1291_s4 + $0x28] sm:$0xff] }
  0x1e   :  { %145 = vperm.xlu1 %889, %v107_v15   ;;  %v188_v22 = vld [vmem:[%s1291_s4 + $0x20] sm:$0xff]  ;;  %v191_v23 = vld [vmem:[%s1291_s4 + $0x38] sm:$0xff]  ;;  %v190_v24 = vld [vmem:[%s1291_s4 + $0x30] sm:$0xff]  ;;  %v88_v61 = vshrl.u32 %v87_v60, 7 }
  0x1f   :  { %140 = vperm.xlu0 %888, %v106_v16   ;;  %v193_v25 = vld [vmem:[%s1291_s4 + $0x48] sm:$0xff]  ;;  %v192_v26 = vld [vmem:[%s1291_s4 + $0x40] sm:$0xff]  ;;  %v195_v28 = vld [vmem:[%s1291_s4 + $0x58] sm:$0xff] }
  0x20   :  { %v890_v27 = vld [vmem:[%s1290_s3] sm:$0xff]   ;;  %v194_v29 = vld [vmem:[%s1291_s4 + $0x50] sm:$0xff]  ;;  %v197_v30 = vld [vmem:[%s1291_s4 + $0x68] sm:$0xff]  ;;  %v89_v62 = vsub.s32 0, %v88_v61 }
  0x21   :  { %846 = vmatprep.mubr.msk.bf16.mxu0 %vm320_vm0, %v890_v27  ;;  %v196_v31 = vld [vmem:[%s1291_s4 + $0x60] sm:$0xff]  ;;  %v199_v32 = vld [vmem:[%s1291_s4 + $0x78] sm:$0xff]  ;;  %v198_v33 = vld [vmem:[%s1291_s4 + $0x70] sm:$0xff] }
  0x22   :  { %207 = vperm.xlu1 %889, %v185_v17   ;;  %v475_v34 = vld [vmem:[%s1293_s6 + $0x8] sm:$0xff]  ;;  %v474_v35 = vld [vmem:[%s1293_s6] sm:$0xff]  ;;  %v477_v36 = vld [vmem:[%s1293_s6 + $0x18] sm:$0xff] }
  0x23   :  { %202 = vperm.xlu0 %888, %v184_v18   ;;  %v476_v37 = vld [vmem:[%s1293_s6 + $0x10] sm:$0xff]  ;;  %v479_v38 = vld [vmem:[%s1293_s6 + $0x28] sm:$0xff]  ;;  %v478_v39 = vld [vmem:[%s1293_s6 + $0x20] sm:$0xff] }
  0x24   :  { %v481_v40 = vld [vmem:[%s1293_s6 + $0x38] sm:$0xff]  ;;  %v480_v41 = vld [vmem:[%s1293_s6 + $0x30] sm:$0xff]  ;;  %v620_v42 = vld [vmem:[%s1294_s7 + $0x8] sm:$0xff] }
  0x25   :  { %v619_v43 = vld [vmem:[%s1294_s7] sm:$0xff]  ;;  %v696_v44 = vld [vmem:[%s1295_s8 + $0x8] sm:$0xff]  ;;  %v697_v46 = vld [vmem:[%s1295_s8 + $0x10] sm:$0xff] }
  0x26   :  { %217 = vperm.xlu1 %889, %v187_v19   ;;  %v695_v45 = vld [vmem:[%s1295_s8] sm:$0xff]  ;;  %v621_v47 = vld [vmem:[%s1294_s7 + $0x10] sm:$0xff]  ;;  %v698_v48 = vld [vmem:[%s1295_s8 + $0x18] sm:$0xff] }
  0x27   :  { %212 = vperm.xlu0 %888, %v186_v20   ;;  %v622_v49 = vld [vmem:[%s1294_s7 + $0x18] sm:$0xff]  ;;  %v699_v50 = vld [vmem:[%s1295_s8 + $0x20] sm:$0xff]  ;;  %v700_v52 = vld [vmem:[%s1295_s8 + $0x28] sm:$0xff] }
  0x28   :  { %v623_v51 = vld [vmem:[%s1294_s7 + $0x20] sm:$0xff]  ;;  %v624_v53 = vld [vmem:[%s1294_s7 + $0x28] sm:$0xff]  ;;  %v701_v54 = vld [vmem:[%s1295_s8 + $0x30] sm:$0xff] }
  0x29   :  { %v625_v55 = vld [vmem:[%s1294_s7 + $0x30] sm:$0xff]  ;;  %v702_v56 = vld [vmem:[%s1295_s8 + $0x38] sm:$0xff]  ;;  %v764_v58 = vld [vmem:[%s1296_s9 + $0x1] sm:$0x1] }
  0x2a   :  { %227 = vperm.xlu1 %889, %v189_v21   ;;  %v626_v57 = vld [vmem:[%s1294_s7 + $0x38] sm:$0xff]  ;;  %v688_v59 = vld [vmem:[%s1296_s9] sm:$0x1] }
  0x2b   :  { %222 = vperm.xlu0 %888, %v188_v22   ;;  %v1228_v63 = vld [vmem:[%s1287_s0] sm:$0x1] }
  0x2c   :  { %v90_v0 = vrot.slane %v1228_v63, %v89_v62 }
  0x2e   :  { %237 = vperm.xlu1 %889, %v191_v23  }
  0x2f   :  { %232 = vperm.xlu0 %888, %v190_v24  }
  0x32   :  { %247 = vperm.xlu1 %889, %v193_v25  }
  0x33   :  { %242 = vperm.xlu0 %888, %v192_v26  }
  0x36   :  { %257 = vperm.xlu1 %889, %v195_v28  }
  0x37   :  { %252 = vperm.xlu0 %888, %v194_v29  }
  0x3a   :  { %267 = vperm.xlu1 %889, %v197_v30  }
  0x3b   :  { %262 = vperm.xlu0 %888, %v196_v31  }
  0x3e   :  { %277 = vperm.xlu1 %889, %v199_v32  }
  0x3f   :  { %272 = vperm.xlu0 %888, %v198_v33  }
  0x42   :  { %489 = vperm.xlu1 %889, %v475_v34  }
  0x43   :  { %484 = vperm.xlu0 %888, %v474_v35  }
  0x46   :  { %499 = vperm.xlu1 %889, %v477_v36  }
  0x47   :  { %494 = vperm.xlu0 %888, %v476_v37  }
  0x4a   :  { %509 = vperm.xlu1 %889, %v479_v38  }
  0x4b   :  { %504 = vperm.xlu0 %888, %v478_v39  }
  0x4e   :  { %519 = vperm.xlu1 %889, %v481_v40  }
  0x4f   :  { %514 = vperm.xlu0 %888, %v480_v41  }
  0x52   :  { %634 = vperm.xlu1 %889, %v620_v42  }
  0x53   :  { %629 = vperm.xlu0 %888, %v619_v43  }
  0x56   :  { %710 = vperm.xlu1 %889, %v696_v44  }
  0x57   :  { %705 = vperm.xlu0 %888, %v695_v45   ;;  %v891_v45 = vld [vmem:[%s1290_s3 + $0x8] sm:$0xff]  }
  0x5a   :  { %715 = vperm.xlu1 %889, %v697_v46   ;;  %v892_v46 = vld [vmem:[%s1290_s3 + $0x10] sm:$0xff]  }
  0x5b   :  { %639 = vperm.xlu0 %888, %v621_v47   ;;  %v893_v47 = vld [vmem:[%s1290_s3 + $0x18] sm:$0xff]  }
  0x5e   :  { %720 = vperm.xlu1 %889, %v698_v48   ;;  %v894_v48 = vld [vmem:[%s1290_s3 + $0x20] sm:$0xff]  }
  0x5f   :  { %644 = vperm.xlu0 %888, %v622_v49   ;;  %v895_v49 = vld [vmem:[%s1290_s3 + $0x28] sm:$0xff]  }
  0x62   :  { %725 = vperm.xlu1 %889, %v699_v50   ;;  %v896_v50 = vld [vmem:[%s1290_s3 + $0x30] sm:$0xff]  }
  0x63   :  { %649 = vperm.xlu0 %888, %v623_v51   ;;  %v897_v51 = vld [vmem:[%s1290_s3 + $0x38] sm:$0xff]  }
  0x66   :  { %730 = vperm.xlu1 %889, %v700_v52   ;;  %v898_v52 = vld [vmem:[%s1292_s5] sm:$0xff]  }
  0x67   :  { %654 = vperm.xlu0 %888, %v624_v53   ;;  %878 = vmatprep.mubr.bf16.mxu1 %v898_v52 }
  0x6a   :  { %735 = vperm.xlu1 %889, %v701_v54  }
  0x6b   :  { %659 = vperm.xlu0 %888, %v625_v55  }
  0x6e   :  { %740 = vperm.xlu1 %889, %v702_v56  }
  0x6f   :  { %664 = vperm.xlu0 %888, %v626_v57  }
  0x72   :  { %767 = vperm.xlu1 %889, %v764_v58  }
  0x73   :  { %691 = vperm.xlu0 %888, %v688_v59  }
  0x81   :  { %v111_v1 = vpop.permute.xlu1 %110 }
  0x82   :  { %v49_v2 = vpop.permute.xlu0 %48 }
  0x83   :  { %v92_v3 = vmul.f32 %v90_v0, %v49_v2 }
  0x85   :  { %v148_v4 = vadd.f32 %v111_v1, %v92_v3  ;;  %v116_v5 = vpop.permute.xlu1 %115 }
  0x86   :  { %v54_v6 = vpop.permute.xlu0 %53 }
  0x87   :  { %v93_v7 = vmul.f32 %v90_v0, %v54_v6  ;;  %902 = vtanh.f32 %v148_v4 }
  0x89   :  { %v149_v8 = vadd.f32 %v116_v5, %v93_v7  ;;  %v64_v9 = vpop.permute.xlu1 %63 }
  0x8a   :  { %v59_v10 = vpop.permute.xlu0 %58  ;;  %v95_v11 = vmul.f32 %v90_v0, %v64_v9 }
  0x8b   :  { %904 = vtanh.f32 %v149_v8  ;;  %v94_v12 = vmul.f32 %v90_v0, %v59_v10 }
  0x8d   :  { %v126_v13 = vpop.permute.xlu1 %125 }
  0x8e   :  { %v121_v14 = vpop.permute.xlu0 %120  ;;  %v151_v15 = vadd.f32 %v126_v13, %v95_v11 }
  0x8f   :  { %v150_v16 = vadd.f32 %v121_v14, %v94_v12 }
  0x90   :  { %906 = vtanh.f32 %v151_v15 }
  0x91   :  { %908 = vtanh.f32 %v150_v16  ;;  %v74_v17 = vpop.permute.xlu1 %73  ;;  %v903_v19 = vpop.eup %902 }
  0x92   :  { %v69_v18 = vpop.permute.xlu0 %68  ;;  %v97_v21 = vmul.f32 %v90_v0, %v74_v17 }
  0x93   :  { %v96_v22 = vmul.f32 %v90_v0, %v69_v18 }
  0x95   :  { %v905_v20 = vpop.eup %904  ;;  %v136_v23 = vpop.permute.xlu1 %135 }
  0x96   :  { %v131_v24 = vpop.permute.xlu0 %130  ;;  %v180_v25 = vpack.c.bf16 %v905_v20, %v903_v19  ;;  %v153_v26 = vadd.f32 %v136_v23, %v97_v21 }
  0x97   :  { %v152_v27 = vadd.f32 %v131_v24, %v96_v22 }
  0x98   :  { %838 = vmatprep.subr.bf16.mxu0 %v180_v25  ;;  %910 = vtanh.f32 %v153_v26 }
  0x99   :  { %839 = vmatpush3.bf16.msra.mxu0 %v180_v25  ;;  %912 = vtanh.f32 %v152_v27  ;;  %v84_v28 = vpop.permute.xlu1 %83 }
  0x9a   :  { %v79_v29 = vpop.permute.xlu0 %78  ;;  %v907_v30 = vpop.eup %906  ;;  %v99_v32 = vmul.f32 %v90_v0, %v84_v28 }
  0x9b   :  { %v909_v31 = vpop.eup %908  ;;  %v98_v33 = vmul.f32 %v90_v0, %v79_v29 }
  0x9c   :  { %v181_v34 = vpack.c.bf16 %v907_v30, %v909_v31 }
  0x9d   :  { %v146_v35 = vpop.permute.xlu1 %145 }
  0x9e   :  { %v141_v36 = vpop.permute.xlu0 %140  ;;  %v155_v37 = vadd.f32 %v146_v35, %v99_v32  ;;  %840 = vmatprep.subr.bf16.mxu0 %v181_v34 }
  0x9f   :  { %v154_v38 = vadd.f32 %v141_v36, %v98_v33  ;;  %841 = vmatpush3.bf16.msra.mxu0 %v181_v34 }
  0xa0   :  { %914 = vtanh.f32 %v155_v37 }
  0xa1   :  { %916 = vtanh.f32 %v154_v38  ;;  %v208_v54 = vpop.permute.xlu1 %207 }
  0xa2   :  { %v911_v39 = vpop.eup %910  ;;  %v203_v53 = vpop.permute.xlu0 %202 }
  0xa3   :  { %v913_v40 = vpop.eup %912 }
  0xa4   :  { %v182_v41 = vpack.c.bf16 %v911_v39, %v913_v40 }
  0xa5   :  { %v218_v56 = vpop.permute.xlu1 %217 }
  0xa6   :  { %842 = vmatprep.subr.bf16.mxu0 %v182_v41  ;;  %v213_v55 = vpop.permute.xlu0 %212 }
  0xa7   :  { %843 = vmatpush3.bf16.msra.mxu0 %v182_v41 }
  0xa9   :  { %v228_v58 = vpop.permute.xlu1 %227 }
  0xaa   :  { %v915_v42 = vpop.eup %914  ;;  %v223_v57 = vpop.permute.xlu0 %222 }
  0xab   :  { %v917_v43 = vpop.eup %916 }
  0xac   :  { %v183_v44 = vpack.c.bf16 %v915_v42, %v917_v43 }
  0xad   :  { %v238_v0 = vpop.permute.xlu1 %237 }
  0xae   :  { %844 = vmatprep.subr.bf16.mxu0 %v183_v44  ;;  %v233_v59 = vpop.permute.xlu0 %232 }
  0xaf   :  { %845 = vmatpush3.bf16.msra.mxu0 %v183_v44 }
  0xb1   :  { %v248_v7 = vpop.permute.xlu1 %247 }
  0xb2   :  { %847 = vmatmul.mubr.msk.bf16.vlgmr.msra.gmra.mrb[0].mxu0 %vm320_vm0, %v891_v45  ;;  %v243_v6 = vpop.permute.xlu0 %242 }
  0xb3   :  { %850 = vmatprep.mubr.msk.bf16.mxu0 %vm320_vm0, %v892_v46 }
  0xb5   :  { %v258_v19 = vpop.permute.xlu1 %257 }
  0xb6   :  { %v253_v15 = vpop.permute.xlu0 %252 }
  0xb9   :  { %v268_v32 = vpop.permute.xlu1 %267 }
  0xba   :  { %851 = vmatmul.mubr.msk.bf16.gmra.mrb[4].mxu0 %vm320_vm0, %v893_v47  ;;  %v263_v27 = vpop.permute.xlu0 %262 }
  0xbb   :  { %854 = vmatprep.mubr.msk.bf16.mxu0 %vm320_vm0, %v894_v48 }
  0xbd   :  { %v278_v44 = vpop.permute.xlu1 %277 }
  0xbe   :  { %v273_v38 = vpop.permute.xlu0 %272 }
  0xc2   :  { %855 = vmatmul.mubr.msk.bf16.gmra.mrb[8].mxu0 %vm320_vm0, %v895_v49 }
  0xc3   :  { %858 = vmatprep.mubr.msk.bf16.mxu0 %vm320_vm0, %v896_v50 }
  0xca   :  { %859 = vmatmul.mubr.msk.bf16.gmra.mrb[12].mxu0 %vm320_vm0, %v897_v51 }
 0x185   :  { %v848_v60 = vpop.f32.mrb[0].mxu0 }
 0x186   :  { %v388_v61 = vadd.f32 %v848_v60, %v213_v55  ;;  %v379_v62 = vpop.f32.mrb[1].mxu0 }
 0x187   :  { %v380_v1 = vadd.f32 %v379_v62, %v203_v53  ;;  %v849_v2 = vpop.f32.mrb[2].mxu0  ;;  %v899_v62 = vld [vmem:[%s1292_s5 + $0x8] sm:$0xff]  }
 0x188   :  { %918 = vtanh.f32 %v388_v61  ;;  %v391_v3 = vadd.f32 %v849_v2, %v218_v56  ;;  %v382_v4 = vpop.f32.mrb[3].mxu0  ;;  %v490_v2 = vpop.permute.xlu1 %489 }
 0x189   :  { %920 = vtanh.f32 %v380_v1  ;;  %v383_v5 = vadd.f32 %v382_v4, %v208_v54  ;;  %v901_v1 = vld [vmem:[%s1292_s5 + $0x18] sm:$0xff]  }
 0x18a   :  { %922 = vtanh.f32 %v391_v3  ;;  %v485_v3 = vpop.permute.xlu0 %484 }
 0x18b   :  { %924 = vtanh.f32 %v383_v5 }
 0x18c   :  { %v500_v4 = vpop.permute.xlu1 %499 }
 0x18d   :  { %v852_v8 = vpop.f32.mrb[4].mxu0 }
 0x18e   :  { %v404_v9 = vadd.f32 %v852_v8, %v233_v59  ;;  %v395_v10 = vpop.f32.mrb[5].mxu0  ;;  %v495_v5 = vpop.permute.xlu0 %494 }
 0x18f   :  { %v396_v11 = vadd.f32 %v395_v10, %v223_v57  ;;  %v853_v12 = vpop.f32.mrb[6].mxu0 }
 0x190   :  { %926 = vtanh.f32 %v404_v9  ;;  %v407_v13 = vadd.f32 %v853_v12, %v238_v0  ;;  %v398_v14 = vpop.f32.mrb[7].mxu0  ;;  %v900_v0 = vld [vmem:[%s1292_s5 + $0x10] sm:$0xff]   ;;  %s991_s5 = smov [#allocation2]  }
 0x191   :  { %928 = vtanh.f32 %v396_v11  ;;  %v399_v16 = vadd.f32 %v398_v14, %v228_v58  ;;  %s786_s15 = sshll.u32 %s991_s5, 4  ;;  %s787_s15 = int_to_ptr.vmem [resolvable:$true] %s786_s15 }
 0x192   :  { %v919_v17 = vpop.eup %918  ;;  %930 = vtanh.f32 %v407_v13  ;;  %s966_s6 = scalar_lea.vmem %s787_s15, 32  ;;  %p971_p1 = scmp.lt.s32.totalorder %s787_s15, %s787_s15 }
 0x193   :  { %v921_v18 = vpop.eup %920  ;;  %932 = vtanh.f32 %v399_v16  ;;  %p967_p0 = scmp.ne.s32.totalorder %s787_s15, %s966_s6  ;;  %p972_p2 = scmp.lt.s32.totalorder %s966_s6, %s966_s6 }
 0x194   :  { %v923_v20 = vpop.eup %922 }
 0x195   :  { %v925_v21 = vpop.eup %924  ;;  %v856_v22 = vpop.f32.mrb[8].mxu0  ;;  %v467_v23 = vpack.c.bf16 %v923_v20, %v919_v17  ;;  %p973_p3 = por %p972_p2, %p971_p1 }
 0x196   :  { %v420_v24 = vadd.f32 %v856_v22, %v253_v15  ;;  %v411_v25 = vpop.f32.mrb[9].mxu0  ;;  %v466_v26 = vpack.c.bf16 %v925_v21, %v921_v18 }
 0x197   :  { %v412_v28 = vadd.f32 %v411_v25, %v243_v6  ;;  %v857_v29 = vpop.f32.mrb[10].mxu0  ;;  %v510_v6 = vpop.permute.xlu1 %509  ;;  %p974_p4 = pnand %p973_p3, %p967_p0 }
 0x198   :  { %934 = vtanh.f32 %v420_v24  ;;  %v423_v30 = vadd.f32 %v857_v29, %v258_v19  ;;  %v414_v31 = vpop.f32.mrb[11].mxu0  ;;  %862 = vmatprep.subr.bf16.mxu1 %v466_v26 }
 0x199   :  { %936 = vtanh.f32 %v412_v28  ;;  %v415_v33 = vadd.f32 %v414_v31, %v248_v7  ;;  %863 = vmatpush3.bf16.msra.mxu1 %v466_v26  ;;  %v505_v7 = vpop.permute.xlu0 %504 }
 0x19a   :  { %v927_v34 = vpop.eup %926  ;;  %938 = vtanh.f32 %v423_v30  ;;  %864 = vmatprep.subr.bf16.mxu1 %v467_v23 }
 0x19b   :  { %v929_v35 = vpop.eup %928  ;;  %940 = vtanh.f32 %v415_v33  ;;  %v520_v8 = vpop.permute.xlu1 %519 }
 0x19c   :  { %v931_v36 = vpop.eup %930 }
 0x19d   :  { %v933_v37 = vpop.eup %932  ;;  %v860_v39 = vpop.f32.mrb[12].mxu0  ;;  %865 = vmatpush3.bf16.msra.mxu1 %v467_v23  ;;  %v469_v40 = vpack.c.bf16 %v931_v36, %v927_v34 }
 0x19e   :  { %v436_v41 = vadd.f32 %v860_v39, %v273_v38  ;;  %v427_v42 = vpop.f32.mrb[13].mxu0  ;;  %v468_v43 = vpack.c.bf16 %v933_v37, %v929_v35  ;;  %v515_v9 = vpop.permute.xlu0 %514 }
 0x19f   :  { %v428_v45 = vadd.f32 %v427_v42, %v263_v27  ;;  %v861_v46 = vpop.f32.mrb[14].mxu0  ;;  %v635_v10 = vpop.permute.xlu1 %634 }
 0x1a0   :  { %942 = vtanh.f32 %v436_v41  ;;  %v439_v47 = vadd.f32 %v861_v46, %v278_v44  ;;  %v430_v48 = vpop.f32.mrb[15].mxu0  ;;  %866 = vmatprep.subr.bf16.mxu1 %v468_v43 }
 0x1a1   :  { %944 = vtanh.f32 %v428_v45  ;;  %v431_v49 = vadd.f32 %v430_v48, %v268_v32  ;;  %867 = vmatpush3.bf16.msra.mxu1 %v468_v43 }
 0x1a2   :  { %v935_v50 = vpop.eup %934  ;;  %946 = vtanh.f32 %v439_v47  ;;  %868 = vmatprep.subr.bf16.mxu1 %v469_v40  ;;  %v630_v11 = vpop.permute.xlu0 %629 }
 0x1a3   :  { %v937_v51 = vpop.eup %936  ;;  %948 = vtanh.f32 %v431_v49  ;;  %v711_v12 = vpop.permute.xlu1 %710 }
 0x1a4   :  { %v939_v52 = vpop.eup %938 }
 0x1a5   :  { %v941_v53 = vpop.eup %940  ;;  %869 = vmatpush3.bf16.msra.mxu1 %v469_v40  ;;  %v471_v54 = vpack.c.bf16 %v939_v52, %v935_v50 }
 0x1a6   :  { %v470_v55 = vpack.c.bf16 %v941_v53, %v937_v51  ;;  %v706_v13 = vpop.permute.xlu0 %705 }
 0x1a7   :  { %v716_v14 = vpop.permute.xlu1 %715 }
 0x1a8   :  { %870 = vmatprep.subr.bf16.mxu1 %v470_v55 }
 0x1a9   :  { %871 = vmatpush3.bf16.msra.mxu1 %v470_v55 }
 0x1aa   :  { %v943_v56 = vpop.eup %942  ;;  %872 = vmatprep.subr.bf16.mxu1 %v471_v54  ;;  %v640_v15 = vpop.permute.xlu0 %639 }
 0x1ab   :  { %v945_v57 = vpop.eup %944  ;;  %v721_v21 = vpop.permute.xlu1 %720 }
 0x1ac   :  { %v947_v58 = vpop.eup %946 }
 0x1ad   :  { %v949_v59 = vpop.eup %948  ;;  %873 = vmatpush3.bf16.msra.mxu1 %v471_v54  ;;  %v473_v60 = vpack.c.bf16 %v947_v58, %v943_v56 }
 0x1ae   :  { %v472_v61 = vpack.c.bf16 %v949_v59, %v945_v57  ;;  %v645_v23 = vpop.permute.xlu0 %644 }
 0x1af   :  { %v726_v27 = vpop.permute.xlu1 %725 }
 0x1b0   :  { %874 = vmatprep.subr.bf16.mxu1 %v472_v61 }
 0x1b1   :  { %875 = vmatpush3.bf16.msra.mxu1 %v472_v61 }
 0x1b2   :  { %876 = vmatprep.subr.bf16.mxu1 %v473_v60  ;;  %v650_v30 = vpop.permute.xlu0 %649 }
 0x1b3   :  { %v731_v39 = vpop.permute.xlu1 %730 }
 0x1b5   :  { %877 = vmatpush3.bf16.msra.mxu1 %v473_v60 }
 0x1b6   :  { %v655_v40 = vpop.permute.xlu0 %654 }
 0x1b7   :  { %v736_v55 = vpop.permute.xlu1 %735 }
 0x1b8   :  { %879 = vmatmul.mubr.bf16.vlgmr.msra.gmra.mrb[0].mxu1 %v899_v62 }
 0x1b9   :  { %882 = vmatprep.mubr.bf16.mxu1 %v900_v0 }
 0x1ba   :  { %v660_v56 = vpop.permute.xlu0 %659 }
 0x1c0   :  { %883 = vmatmul.mubr.bf16.gmra.mrb[4].mxu1 %v901_v1 }
 0x28b   :  { %v880_v16 = vpop.f32.mrb[0].mxu1 }
 0x28c   :  { %v589_v17 = vadd.f32 %v880_v16, %v495_v5  ;;  %v580_v18 = vpop.f32.mrb[1].mxu1 }
 0x28d   :  { %v581_v19 = vadd.f32 %v580_v18, %v485_v3  ;;  %v881_v20 = vpop.f32.mrb[2].mxu1 }
 0x28e   :  { %v583_v22 = vpop.f32.mrb[3].mxu1  ;;  %v592_v24 = vadd.f32 %v881_v20, %v500_v4 }
 0x28f   :  { %950 = vtanh.f32 %v581_v19  ;;  %v584_v25 = vadd.f32 %v583_v22, %v490_v2 }
 0x290   :  { %952 = vtanh.f32 %v589_v17 }
 0x291   :  { %954 = vtanh.f32 %v584_v25 }
 0x292   :  { %956 = vtanh.f32 %v592_v24 }
 0x293   :  { %v884_v26 = vpop.f32.mrb[4].mxu1 }
 0x294   :  { %v605_v28 = vadd.f32 %v884_v26, %v515_v9  ;;  %v596_v29 = vpop.f32.mrb[5].mxu1  ;;  %v741_v9 = vpop.permute.xlu1 %740  ;;  %v772_v26 = vmul.f32 50.0, %v1228_v63 }
 0x295   :  { %v597_v31 = vadd.f32 %v596_v29, %v505_v7  ;;  %v885_v32 = vpop.f32.mrb[6].mxu1 }
 0x296   :  { %v599_v33 = vpop.f32.mrb[7].mxu1  ;;  %v608_v34 = vadd.f32 %v885_v32, %v520_v8  ;;  %v771_v32 = vmul.f32 86.60254, %v1228_v63 }
 0x297   :  { %958 = vtanh.f32 %v597_v31  ;;  %v600_v35 = vadd.f32 %v599_v33, %v510_v6 }
 0x298   :  { %960 = vtanh.f32 %v605_v28 }
 0x299   :  { %v951_v36 = vpop.eup %950  ;;  %962 = vtanh.f32 %v600_v35 }
 0x29a   :  { %v953_v37 = vpop.eup %952  ;;  %964 = vtanh.f32 %v608_v34  ;;  %v667_v41 = vmul.f32 %v951_v36, %v630_v11  ;;  %v743_v42 = vmul.f32 %v951_v36, %v706_v13  ;;  %v768_v34 = vpop.permute.xlu1 %767 }
 0x29b   :  { %v955_v38 = vpop.eup %954  ;;  %v669_v46 = vmul.f32 %v953_v37, %v640_v15  ;;  %v745_v47 = vmul.f32 %v953_v37, %v716_v14 }
 0x29c   :  { %v668_v43 = vmul.f32 %v955_v38, %v635_v10  ;;  %v744_v44 = vmul.f32 %v955_v38, %v711_v12  ;;  %v957_v45 = vpop.eup %956  ;;  %v665_v10 = vpop.permute.xlu0 %664 }
 0x29d   :  { %v670_v50 = vmul.f32 %v957_v45, %v645_v23  ;;  %v746_v51 = vmul.f32 %v957_v45, %v721_v21  ;;  %v773_v21 = vmul.f32 %v1228_v63, %v1228_v63 }
 0x29e   :  { %v675_v48 = vadd.f32 %v668_v43, %v667_v41  ;;  %v751_v49 = vadd.f32 %v744_v44, %v743_v42 }
 0x2a0   :  { %v676_v52 = vadd.f32 %v675_v48, %v669_v46  ;;  %v752_v53 = vadd.f32 %v751_v49, %v745_v47  ;;  %v692_v35 = vpop.permute.xlu0 %691 }
 0x2a1   :  { %v959_v54 = vpop.eup %958 }
 0x2a2   :  { %v961_v57 = vpop.eup %960  ;;  %v671_v58 = vmul.f32 %v959_v54, %v650_v30  ;;  %v677_v59 = vadd.f32 %v676_v52, %v670_v50  ;;  %v747_v60 = vmul.f32 %v959_v54, %v726_v27  ;;  %v753_v61 = vadd.f32 %v752_v53, %v746_v51 }
 0x2a3   :  { %v963_v62 = vpop.eup %962  ;;  %v673_v5 = vmul.f32 %v961_v57, %v660_v56  ;;  %v749_v6 = vmul.f32 %v961_v57, %v736_v55  ;;  %v774_v27 = vmul.f32 4.905, %v773_v21 }
 0x2a4   :  { %v678_v0 = vadd.f32 %v677_v59, %v671_v58  ;;  %v754_v1 = vadd.f32 %v753_v61, %v747_v60  ;;  %v672_v2 = vmul.f32 %v963_v62, %v655_v40  ;;  %v748_v3 = vmul.f32 %v963_v62, %v731_v39  ;;  %v965_v4 = vpop.eup %964 }
 0x2a5   :  { %v674_v11 = vmul.f32 %v965_v4, %v665_v10  ;;  %v750_v12 = vmul.f32 %v965_v4, %v741_v9  ;;  %v775_v33 = vsub.f32 %v772_v26, %v774_v27 }
 0x2a6   :  { %v679_v7 = vadd.f32 %v678_v0, %v672_v2  ;;  %v755_v8 = vadd.f32 %v754_v1, %v748_v3 }
 0x2a8   :  { %v680_v13 = vadd.f32 %v679_v7, %v673_v5  ;;  %v756_v14 = vadd.f32 %v755_v8, %v749_v6 }
 0x2aa   :  { %v681_v15 = vadd.f32 %v680_v13, %v674_v11  ;;  %v757_v16 = vadd.f32 %v756_v14, %v750_v12 }
 0x2ac   :  { %v682_v17 = vrot.slane %v681_v15, 4  ;;  %v758_v18 = vrot.slane %v757_v16, 4 }
 0x2ae   :  { %v683_v19 = vadd.f32 %v682_v17, %v681_v15  ;;  %v759_v20 = vadd.f32 %v758_v18, %v757_v16 }
 0x2b0   :  { %v684_v22 = vrot.slane %v683_v19, 2  ;;  %v760_v23 = vrot.slane %v759_v20, 2 }
 0x2b2   :  { %v685_v24 = vadd.f32 %v684_v22, %v683_v19  ;;  %v761_v25 = vadd.f32 %v760_v23, %v759_v20 }
 0x2b4   :  { %v686_v28 = vrot.slane %v685_v24, 1  ;;  %v762_v29 = vrot.slane %v761_v25, 1 }
 0x2b6   :  { %v687_v30 = vadd.f32 %v686_v28, %v685_v24  ;;  %v763_v31 = vadd.f32 %v762_v29, %v761_v25 }
 0x2b8   :  { %v694_v36 = vadd.f32 %v692_v35, %v687_v30  ;;  %v770_v37 = vadd.f32 %v768_v34, %v763_v31 }
 0x2ba   :  { %v776_v38 = vadd.f32 %v771_v32, %v694_v36  ;;  %v778_v39 = vadd.f32 %v775_v33, %v770_v37 }
 0x2bc   :  { %777 = vst [vmem:[#allocation2] sm:$0x1] %v776_v38  ;;  %779 = vst [vmem:[#allocation2 + $0x1] sm:$0x1] %v778_v39 }
 0x2bd   :  { %977 = shalt.err (!%p974_p4)
}
 0x2be   :  { %s978_s18 = scalar_lea.hbm %s1297_s10, 32 }
 0x2bf   :  { %p979_p5 = scmp.ne.s32.totalorder %s1297_s10, %s978_s18  ;;  %p982_p6 = scmp.lt.u32.totalorder %s978_s18, %s1297_s10 }
 0x2c1   :  { %p984_p7 = pnand %p982_p6, %p979_p5 }
 0x2c3   :  { %987 = shalt.err (!%p984_p7)
}
 0x2c4   :  { %789 = dma.vmem_to_hbm [thread:$0]  %s787_s15, 32, %s1297_s10, [#allocation3]  }
 0x2c5   :  { %988 = dma.done.wait [#allocation3], 32  }
 0x2c6   :  { %989 = vsyncadd [#allocation3], 4294967264 }
 0x2c7   :  { %793 = vsyncpa [#allocation3], 1 }

</bundles_post_ra>
